<compile_context>
chip_gen: v7x
topology: tpu7x:2x2x1
jax: 0.10.0
libtpu: 0.0.40
codegen_flags: <defaults>
</compile_context>

<pallas_src>
import functools

import jax
import jax.numpy as jnp
from jax.experimental import pallas as pl
from jax.experimental.pallas import tpu as pltpu


def _lane_group_allreduce(row, group, ngroups):
    """row: (1, group*ngroups). Returns a row where lane (g*group + c) holds
    the sum over all g of row[:, g*group + c] — i.e. the per-channel total,
    already broadcast back to every group position."""
    if ngroups == 1:
        return row
    if (ngroups & (ngroups - 1)) == 0:
        # Rotate-add butterfly on the lane axis (XLU rolls + VPU adds on one row).
        s = 1
        while s < ngroups:
            row = row + pltpu.roll(row, shift=s * group, axis=1)
            s *= 2
        return row
    # Generic fallback (non power-of-2 group count): one small relayout.
    per_c = jnp.sum(row.reshape(ngroups, group), axis=0, keepdims=True)
    return jnp.tile(per_c, (1, ngroups))


def _base_block_kernel(xp_ref, w_ref, b_ref, o_ref, *, bn, Ho, Wo, Cout, stride):
    """Processes `bn` samples per grid step.

    xp_ref: (bn, Hp, Wp*Cin)        padded input, lane-flattened, bf16
    w_ref : (3, Wp*Cin, Wo*Cout)    block-banded conv weight (per kh), bf16
    b_ref : (1, Wo*Cout)            conv bias tiled over w, f32
    o_ref : (bn, Ho, Wo*Cout)       lane-dense output
    """
    inv_n = 1.0 / float(Ho * Wo)
    for n in range(bn):
        # Conv: 3 banded matmuls, one per kernel row.  LHS per kh is a plain
        # row slab of the padded image (3 VMEM loads, no im2col relayouts).
        acc = None
        for kh in range(3):
            if stride == 1:
                lhs = xp_ref[n, kh:kh + Ho, :]                       # (Ho, Wp*Cin)
            else:
                lhs = xp_ref[n, pl.ds(kh, Ho, stride=stride), :]     # strided rows
            d = jnp.dot(lhs, w_ref[kh], preferred_element_type=jnp.float32)
            acc = d if acc is None else acc + d                      # (Ho, Wo*Cout) f32
        acc = acc + b_ref[...]                                       # bias (cancels in IN, kept for fidelity)

        # InstanceNorm2d (per-sample, per-channel, biased var, eps=1e-5, no affine),
        # entirely in the dense (Ho, Wo*Cout) layout.
        col_sum = jnp.sum(acc, axis=0, keepdims=True)                # (1, Wo*Cout) sublane reduce
        mean = _lane_group_allreduce(col_sum, Cout, Wo) * inv_n      # per-channel, lane-broadcast
        diff = acc - mean
        col_sq = jnp.sum(diff * diff, axis=0, keepdims=True)
        var = _lane_group_allreduce(col_sq, Cout, Wo) * inv_n
        y = diff * jax.lax.rsqrt(var + 1e-5)

        # LeakyReLU(0.2)
        y = jnp.where(y >= 0, y, 0.2 * y)

        # Lane-dense store (Wo*Cout = 128 at the test shape -> full-width vst).
        o_ref[n, :, :] = y.astype(o_ref.dtype)


def _band_weight(w_hwio, Wp, Wo, stride, dtype):
    """Build the block-banded weight: (3, Wp*Cin, Wo*Cout) with
    out[kh, wi*Cin+ci, w*Cout+co] = w_hwio[kh, wi - w*stride, ci, co] (else 0)."""
    KH, KW, Cin, Cout = w_hwio.shape
    wf = w_hwio.astype(jnp.float32)
    cols = jnp.arange(Wo)
    mats = []
    for kh in range(KH):
        m = jnp.zeros((Wp, Cin, Wo, Cout), jnp.float32)
        for kw in range(KW):
            sel = jnp.zeros((Wp, Wo), jnp.float32).at[cols * stride + kw, cols].set(1.0)
            m = m + sel[:, None, :, None] * wf[kh, kw][None, :, None, :]
        mats.append(m.reshape(Wp * Cin, Wo * Cout))
    return jnp.stack(mats, axis=0).astype(dtype)


def _single_tensorcore_chip():
    """True for chips with one TensorCore (v5e, v6e) where folding the batch
    into a single grid step saves pure per-step overhead."""
    try:
        kind = jax.devices()[0].device_kind.lower()
    except Exception:
        return False
    return any(t in kind for t in ("v5 lite", "v5e", "v5litepod", "v6 lite", "v6e"))


def base_block_forward(x_nhwc, w_hwio, b, *, stride=1, matmul_dtype=jnp.bfloat16,
                       out_dtype=None, fold_batch=None):
    """x_nhwc: (N, H, W, Cin); w_hwio: (3, 3, Cin, Cout); b: (Cout,)."""
    N, H, W, Cin = x_nhwc.shape
    Cout = w_hwio.shape[-1]
    Ho = (H + 2 - 3) // stride + 1
    Wo = (W + 2 - 3) // stride + 1
    Hp, Wp = H + 2, W + 2
    out_dtype = x_nhwc.dtype if out_dtype is None else out_dtype

    if fold_batch is None:
        fold_batch = (N > 1) and _single_tensorcore_chip()
    bn = N if fold_batch else 1   # samples per grid step

    # padding=1 on spatial dims, lane-flatten (W, Cin), cast matmul operands
    # to bf16 (halves in-kernel DMA bytes; bf16-native MXU).
    # TODO(synk): at production sizes this pad/cast is an extra HBM round trip
    # of the whole input; move the 1-px halo into the kernel (masked border
    # taps) or fuse the bf16 cast upstream in the model.
    xp = jnp.pad(x_nhwc, ((0, 0), (1, 1), (1, 1), (0, 0)))
    xp_flat = xp.reshape(N, Hp, Wp * Cin).astype(matmul_dtype)
    w_band = _band_weight(w_hwio, Wp, Wo, stride, matmul_dtype)      # (3, Wp*Cin, Wo*Cout)
    b_row = jnp.tile(b.astype(jnp.float32), (Wo,)).reshape(1, Wo * Cout)

    kernel = functools.partial(_base_block_kernel, bn=bn, Ho=Ho, Wo=Wo,
                               Cout=Cout, stride=stride)

    # TODO(synk): for production image sizes (e.g. 512x512x64) the banded
    # weight and whole-image block no longer fit (v7x has 64 MiB VMEM/TC);
    # switch to an H-tiled grid axis ("arbitrary") with a two-pass instance
    # norm and per-tile im2col.
    # TODO(synk): stride>1 uses pl.ds(stride=) ref loads per review but is not
    # exercised by the built-in test below.
    out_flat = pl.pallas_call(
        kernel,
        out_shape=jax.ShapeDtypeStruct((N, Ho, Wo * Cout), out_dtype),
        grid_spec=pltpu.PrefetchScalarGridSpec(
            num_scalar_prefetch=0,
            grid=(N // bn,),
            in_specs=[
                pl.BlockSpec((bn, Hp, Wp * Cin), lambda i: (i, 0, 0)),
                pl.BlockSpec((3, Wp * Cin, Wo * Cout), lambda i: (0, 0, 0)),
                pl.BlockSpec((1, Wo * Cout), lambda i: (0, 0)),
            ],
            out_specs=pl.BlockSpec((bn, Ho, Wo * Cout), lambda i: (i, 0, 0)),
        ),
        compiler_params=pltpu.CompilerParams(
            dimension_semantics=("parallel",),
        ),
    )(xp_flat, w_band, b_row)

    # Free (contiguous) reshape back to NHWC.
    return out_flat.reshape(N, Ho, Wo, Cout)


def _reference_forward(x_nhwc, w_hwio, b, *, stride=1):
    y = jax.lax.conv_general_dilated(
        x_nhwc, w_hwio, window_strides=(stride, stride),
        padding=((1, 1), (1, 1)),
        dimension_numbers=("NHWC", "HWIO", "NHWC"),
        precision=jax.lax.Precision.HIGHEST)
    y = y + b
    mean = jnp.mean(y, axis=(1, 2), keepdims=True)
    var = jnp.mean((y - mean) ** 2, axis=(1, 2), keepdims=True)
    y = (y - mean) * jax.lax.rsqrt(var + 1e-5)
    return jnp.where(y >= 0, y, 0.2 * y)


if __name__ == "__main__":
    key = jax.random.PRNGKey(0)
    k_x, k_w, k_b = jax.random.split(key, 3)

    N, Cin, H, W = 2, 4, 16, 16
    Cout = 8  # output_nc == mid_channels
    stride = 1

    # NHWC input (the PyTorch module would see this as NCHW x.transpose).
    x = jax.random.normal(k_x, (N, H, W, Cin), dtype=jnp.float32)
    # Deterministic synthetic parameters (no checkpoint load).
    w = 0.1 * jax.random.normal(k_w, (3, 3, Cin, Cout), dtype=jnp.float32)
    b = 0.1 * jax.random.normal(k_b, (Cout,), dtype=jnp.float32)

    # Exercise both batch-handling paths: folded batch (one grid step, as
    # auto-selected on single-TC v5e/v6e) and grid=(N,) (as used on v7x).
    out_fold = jax.block_until_ready(
        base_block_forward(x, w, b, stride=stride, fold_batch=True))
    out_grid = jax.block_until_ready(
        base_block_forward(x, w, b, stride=stride, fold_batch=False))

    # Tight check: f32 reference on bf16-rounded operands (bf16*bf16 products
    # are exact in f32, so only accumulation order differs from the kernel).
    x_r = x.astype(jnp.bfloat16).astype(jnp.float32)
    w_r = w.astype(jnp.bfloat16).astype(jnp.float32)
    ref_bf16 = _reference_forward(x_r, w_r, b, stride=stride)
    for out in (out_fold, out_grid):
        assert out.shape == ref_bf16.shape
        assert jnp.allclose(out, ref_bf16, atol=2e-3, rtol=2e-3), \
            "mismatch vs bf16-rounded reference"

    # Loose check against the exact f32 reference (bf16 matmul approximation).
    ref_f32 = _reference_forward(x, w, b, stride=stride)
    assert jnp.allclose(out_fold, ref_f32, atol=5e-2, rtol=5e-2), \
        "mismatch vs f32 reference (folded batch)"
    assert jnp.allclose(out_grid, ref_f32, atol=5e-2, rtol=5e-2), \
        "mismatch vs f32 reference (grid batch)"

    print("KERNEL_OK")
</pallas_src>

<mosaic_0001>
module attributes {stable_mosaic.version = 11 : i64} {
  func.func @_base_block_kernel(%arg0: i32, %arg1: memref<2x18x72xbf16, #tpu.memory_space<vmem>>, %arg2: memref<3x72x128xbf16, #tpu.memory_space<vmem>>, %arg3: memref<1x128xf32, #tpu.memory_space<vmem>>, %arg4: memref<2x16x128xf32, #tpu.memory_space<vmem>>) attributes {dimension_semantics = [#tpu.dimension_semantics<parallel>], iteration_bounds = array<i64: 1>, scalar_prefetch = 0 : i64, scratch_operands = 0 : i64, tpu.core_type = #tpu.core_type<tc>, window_params = [{transform_indices = @transform_0, window_bounds = array<i64: 2, 18, 72>}, {pipeline_mode = #tpu.pipeline_mode<synchronous>, transform_indices = @transform_1, window_bounds = array<i64: 3, 72, 128>}, {pipeline_mode = #tpu.pipeline_mode<synchronous>, transform_indices = @transform_2, window_bounds = array<i64: 1, 128>}, {transform_indices = @transform_3, window_bounds = array<i64: 2, 16, 128>}]} {
    %c0 = arith.constant 0 : index
    %c0_0 = arith.constant 0 : index
    %c0_1 = arith.constant 0 : index
    %0 = vector.load %arg1[%c0, %c0_0, %c0_1] : memref<2x18x72xbf16, #tpu.memory_space<vmem>>, vector<1x16x72xbf16>
    %1 = vector.shape_cast %0 : vector<1x16x72xbf16> to vector<16x72xbf16>
    %c0_2 = arith.constant 0 : index
    %c0_3 = arith.constant 0 : index
    %c0_4 = arith.constant 0 : index
    %2 = vector.load %arg2[%c0_2, %c0_3, %c0_4] : memref<3x72x128xbf16, #tpu.memory_space<vmem>>, vector<1x72x128xbf16>
    %3 = vector.shape_cast %2 : vector<1x72x128xbf16> to vector<72x128xbf16>
    %cst = arith.constant dense<0.000000e+00> : vector<16x128xf32>
    %4 = tpu.matmul %1, %3, %cst {dimension_numbers = #tpu.dot_dimension_numbers<[1], [0], [0], [1], [0, 0, 1, 1], [], []>} : vector<16x72xbf16>, vector<72x128xbf16>, vector<16x128xf32> -> vector<16x128xf32>
    %c0_5 = arith.constant 0 : index
    %c1 = arith.constant 1 : index
    %c0_6 = arith.constant 0 : index
    %5 = vector.load %arg1[%c0_5, %c1, %c0_6] : memref<2x18x72xbf16, #tpu.memory_space<vmem>>, vector<1x16x72xbf16>
    %6 = vector.shape_cast %5 : vector<1x16x72xbf16> to vector<16x72xbf16>
    %c1_7 = arith.constant 1 : index
    %c0_8 = arith.constant 0 : index
    %c0_9 = arith.constant 0 : index
    %7 = vector.load %arg2[%c1_7, %c0_8, %c0_9] : memref<3x72x128xbf16, #tpu.memory_space<vmem>>, vector<1x72x128xbf16>
    %8 = vector.shape_cast %7 : vector<1x72x128xbf16> to vector<72x128xbf16>
    %cst_10 = arith.constant dense<0.000000e+00> : vector<16x128xf32>
    %9 = tpu.matmul %6, %8, %cst_10 {dimension_numbers = #tpu.dot_dimension_numbers<[1], [0], [0], [1], [0, 0, 1, 1], [], []>} : vector<16x72xbf16>, vector<72x128xbf16>, vector<16x128xf32> -> vector<16x128xf32>
    %10 = arith.addf %4, %9 : vector<16x128xf32>
    %c0_11 = arith.constant 0 : index
    %c2 = arith.constant 2 : index
    %c0_12 = arith.constant 0 : index
    %11 = vector.load %arg1[%c0_11, %c2, %c0_12] : memref<2x18x72xbf16, #tpu.memory_space<vmem>>, vector<1x16x72xbf16>
    %12 = vector.shape_cast %11 : vector<1x16x72xbf16> to vector<16x72xbf16>
    %c2_13 = arith.constant 2 : index
    %c0_14 = arith.constant 0 : index
    %c0_15 = arith.constant 0 : index
    %13 = vector.load %arg2[%c2_13, %c0_14, %c0_15] : memref<3x72x128xbf16, #tpu.memory_space<vmem>>, vector<1x72x128xbf16>
    %14 = vector.shape_cast %13 : vector<1x72x128xbf16> to vector<72x128xbf16>
    %cst_16 = arith.constant dense<0.000000e+00> : vector<16x128xf32>
    %15 = tpu.matmul %12, %14, %cst_16 {dimension_numbers = #tpu.dot_dimension_numbers<[1], [0], [0], [1], [0, 0, 1, 1], [], []>} : vector<16x72xbf16>, vector<72x128xbf16>, vector<16x128xf32> -> vector<16x128xf32>
    %16 = arith.addf %10, %15 : vector<16x128xf32>
    %c0_17 = arith.constant 0 : index
    %c0_18 = arith.constant 0 : index
    %17 = vector.load %arg3[%c0_17, %c0_18] : memref<1x128xf32, #tpu.memory_space<vmem>>, vector<1x128xf32>
    %18 = vector.broadcast %17 : vector<1x128xf32> to vector<16x128xf32>
    %19 = arith.addf %16, %18 : vector<16x128xf32>
    %cst_19 = arith.constant dense<0.000000e+00> : vector<128xf32>
    %20 = vector.multi_reduction <add>, %19, %cst_19 [0] : vector<16x128xf32> to vector<128xf32>
    %21 = vector.shape_cast %20 : vector<128xf32> to vector<1x128xf32>
    %c8_i32 = arith.constant 8 : i32
    %22 = tpu.dynamic_rotate %21 by %c8_i32 dim 1 : vector<1x128xf32>, i32 -> vector<1x128xf32>
    %23 = arith.addf %21, %22 : vector<1x128xf32>
    %c16_i32 = arith.constant 16 : i32
    %24 = tpu.dynamic_rotate %23 by %c16_i32 dim 1 : vector<1x128xf32>, i32 -> vector<1x128xf32>
    %25 = arith.addf %23, %24 : vector<1x128xf32>
    %c32_i32 = arith.constant 32 : i32
    %26 = tpu.dynamic_rotate %25 by %c32_i32 dim 1 : vector<1x128xf32>, i32 -> vector<1x128xf32>
    %27 = arith.addf %25, %26 : vector<1x128xf32>
    %c64_i32 = arith.constant 64 : i32
    %28 = tpu.dynamic_rotate %27 by %c64_i32 dim 1 : vector<1x128xf32>, i32 -> vector<1x128xf32>
    %29 = arith.addf %27, %28 : vector<1x128xf32>
    %cst_20 = arith.constant 3.906250e-03 : f32
    %30 = vector.broadcast %cst_20 : f32 to vector<1x128xf32>
    %31 = arith.mulf %29, %30 : vector<1x128xf32>
    %32 = vector.broadcast %31 : vector<1x128xf32> to vector<16x128xf32>
    %33 = arith.subf %19, %32 : vector<16x128xf32>
    %34 = arith.mulf %33, %33 : vector<16x128xf32>
    %cst_21 = arith.constant dense<0.000000e+00> : vector<128xf32>
    %35 = vector.multi_reduction <add>, %34, %cst_21 [0] : vector<16x128xf32> to vector<128xf32>
    %36 = vector.shape_cast %35 : vector<128xf32> to vector<1x128xf32>
    %c8_i32_22 = arith.constant 8 : i32
    %37 = tpu.dynamic_rotate %36 by %c8_i32_22 dim 1 : vector<1x128xf32>, i32 -> vector<1x128xf32>
    %38 = arith.addf %36, %37 : vector<1x128xf32>
    %c16_i32_23 = arith.constant 16 : i32
    %39 = tpu.dynamic_rotate %38 by %c16_i32_23 dim 1 : vector<1x128xf32>, i32 -> vector<1x128xf32>
    %40 = arith.addf %38, %39 : vector<1x128xf32>
    %c32_i32_24 = arith.constant 32 : i32
    %41 = tpu.dynamic_rotate %40 by %c32_i32_24 dim 1 : vector<1x128xf32>, i32 -> vector<1x128xf32>
    %42 = arith.addf %40, %41 : vector<1x128xf32>
    %c64_i32_25 = arith.constant 64 : i32
    %43 = tpu.dynamic_rotate %42 by %c64_i32_25 dim 1 : vector<1x128xf32>, i32 -> vector<1x128xf32>
    %44 = arith.addf %42, %43 : vector<1x128xf32>
    %cst_26 = arith.constant 3.906250e-03 : f32
    %45 = vector.broadcast %cst_26 : f32 to vector<1x128xf32>
    %46 = arith.mulf %44, %45 : vector<1x128xf32>
    %cst_27 = arith.constant 9.99999974E-6 : f32
    %47 = vector.broadcast %cst_27 : f32 to vector<1x128xf32>
    %48 = arith.addf %46, %47 : vector<1x128xf32>
    %49 = math.rsqrt %48 : vector<1x128xf32>
    %50 = vector.broadcast %49 : vector<1x128xf32> to vector<16x128xf32>
    %51 = arith.mulf %33, %50 : vector<16x128xf32>
    %cst_28 = arith.constant 0.000000e+00 : f32
    %52 = vector.broadcast %cst_28 : f32 to vector<16x128xf32>
    %53 = arith.cmpf oge, %51, %52 : vector<16x128xf32>
    %cst_29 = arith.constant 2.000000e-01 : f32
    %54 = vector.broadcast %cst_29 : f32 to vector<16x128xf32>
    %55 = arith.mulf %54, %51 : vector<16x128xf32>
    %56 = arith.select %53, %51, %55 : vector<16x128xi1>, vector<16x128xf32>
    %c0_30 = arith.constant 0 : index
    %c0_31 = arith.constant 0 : index
    %c0_32 = arith.constant 0 : index
    %57 = vector.load %arg4[%c0_30, %c0_31, %c0_32] : memref<2x16x128xf32, #tpu.memory_space<vmem>>, vector<1x16x128xf32>
    %58 = vector.shape_cast %57 : vector<1x16x128xf32> to vector<16x128xf32>
    %59 = vector.shape_cast %56 : vector<16x128xf32> to vector<1x16x128xf32>
    tpu.vector_store %arg4[%c0_30, %c0_31, %c0_32], %59 {strides = array<i32>} : memref<2x16x128xf32, #tpu.memory_space<vmem>>, vector<1x16x128xf32>,
    %c1_33 = arith.constant 1 : index
    %c0_34 = arith.constant 0 : index
    %c0_35 = arith.constant 0 : index
    %60 = vector.load %arg1[%c1_33, %c0_34, %c0_35] : memref<2x18x72xbf16, #tpu.memory_space<vmem>>, vector<1x16x72xbf16>
    %61 = vector.shape_cast %60 : vector<1x16x72xbf16> to vector<16x72xbf16>
    %c0_36 = arith.constant 0 : index
    %c0_37 = arith.constant 0 : index
    %c0_38 = arith.constant 0 : index
    %62 = vector.load %arg2[%c0_36, %c0_37, %c0_38] : memref<3x72x128xbf16, #tpu.memory_space<vmem>>, vector<1x72x128xbf16>
    %63 = vector.shape_cast %62 : vector<1x72x128xbf16> to vector<72x128xbf16>
    %cst_39 = arith.constant dense<0.000000e+00> : vector<16x128xf32>
    %64 = tpu.matmul %61, %63, %cst_39 {dimension_numbers = #tpu.dot_dimension_numbers<[1], [0], [0], [1], [0, 0, 1, 1], [], []>} : vector<16x72xbf16>, vector<72x128xbf16>, vector<16x128xf32> -> vector<16x128xf32>
    %c1_40 = arith.constant 1 : index
    %c1_41 = arith.constant 1 : index
    %c0_42 = arith.constant 0 : index
    %65 = vector.load %arg1[%c1_40, %c1_41, %c0_42] : memref<2x18x72xbf16, #tpu.memory_space<vmem>>, vector<1x16x72xbf16>
    %66 = vector.shape_cast %65 : vector<1x16x72xbf16> to vector<16x72xbf16>
    %c1_43 = arith.constant 1 : index
    %c0_44 = arith.constant 0 : index
    %c0_45 = arith.constant 0 : index
    %67 = vector.load %arg2[%c1_43, %c0_44, %c0_45] : memref<3x72x128xbf16, #tpu.memory_space<vmem>>, vector<1x72x128xbf16>
    %68 = vector.shape_cast %67 : vector<1x72x128xbf16> to vector<72x128xbf16>
    %cst_46 = arith.constant dense<0.000000e+00> : vector<16x128xf32>
    %69 = tpu.matmul %66, %68, %cst_46 {dimension_numbers = #tpu.dot_dimension_numbers<[1], [0], [0], [1], [0, 0, 1, 1], [], []>} : vector<16x72xbf16>, vector<72x128xbf16>, vector<16x128xf32> -> vector<16x128xf32>
    %70 = arith.addf %64, %69 : vector<16x128xf32>
    %c1_47 = arith.constant 1 : index
    %c2_48 = arith.constant 2 : index
    %c0_49 = arith.constant 0 : index
    %71 = vector.load %arg1[%c1_47, %c2_48, %c0_49] : memref<2x18x72xbf16, #tpu.memory_space<vmem>>, vector<1x16x72xbf16>
    %72 = vector.shape_cast %71 : vector<1x16x72xbf16> to vector<16x72xbf16>
    %c2_50 = arith.constant 2 : index
    %c0_51 = arith.constant 0 : index
    %c0_52 = arith.constant 0 : index
    %73 = vector.load %arg2[%c2_50, %c0_51, %c0_52] : memref<3x72x128xbf16, #tpu.memory_space<vmem>>, vector<1x72x128xbf16>
    %74 = vector.shape_cast %73 : vector<1x72x128xbf16> to vector<72x128xbf16>
    %cst_53 = arith.constant dense<0.000000e+00> : vector<16x128xf32>
    %75 = tpu.matmul %72, %74, %cst_53 {dimension_numbers = #tpu.dot_dimension_numbers<[1], [0], [0], [1], [0, 0, 1, 1], [], []>} : vector<16x72xbf16>, vector<72x128xbf16>, vector<16x128xf32> -> vector<16x128xf32>
    %76 = arith.addf %70, %75 : vector<16x128xf32>
    %c0_54 = arith.constant 0 : index
    %c0_55 = arith.constant 0 : index
    %77 = vector.load %arg3[%c0_54, %c0_55] : memref<1x128xf32, #tpu.memory_space<vmem>>, vector<1x128xf32>
    %78 = vector.broadcast %77 : vector<1x128xf32> to vector<16x128xf32>
    %79 = arith.addf %76, %78 : vector<16x128xf32>
    %cst_56 = arith.constant dense<0.000000e+00> : vector<128xf32>
    %80 = vector.multi_reduction <add>, %79, %cst_56 [0] : vector<16x128xf32> to vector<128xf32>
    %81 = vector.shape_cast %80 : vector<128xf32> to vector<1x128xf32>
    %c8_i32_57 = arith.constant 8 : i32
    %82 = tpu.dynamic_rotate %81 by %c8_i32_57 dim 1 : vector<1x128xf32>, i32 -> vector<1x128xf32>
    %83 = arith.addf %81, %82 : vector<1x128xf32>
    %c16_i32_58 = arith.constant 16 : i32
    %84 = tpu.dynamic_rotate %83 by %c16_i32_58 dim 1 : vector<1x128xf32>, i32 -> vector<1x128xf32>
    %85 = arith.addf %83, %84 : vector<1x128xf32>
    %c32_i32_59 = arith.constant 32 : i32
    %86 = tpu.dynamic_rotate %85 by %c32_i32_59 dim 1 : vector<1x128xf32>, i32 -> vector<1x128xf32>
    %87 = arith.addf %85, %86 : vector<1x128xf32>
    %c64_i32_60 = arith.constant 64 : i32
    %88 = tpu.dynamic_rotate %87 by %c64_i32_60 dim 1 : vector<1x128xf32>, i32 -> vector<1x128xf32>
    %89 = arith.addf %87, %88 : vector<1x128xf32>
    %cst_61 = arith.constant 3.906250e-03 : f32
    %90 = vector.broadcast %cst_61 : f32 to vector<1x128xf32>
    %91 = arith.mulf %89, %90 : vector<1x128xf32>
    %92 = vector.broadcast %91 : vector<1x128xf32> to vector<16x128xf32>
    %93 = arith.subf %79, %92 : vector<16x128xf32>
    %94 = arith.mulf %93, %93 : vector<16x128xf32>
    %cst_62 = arith.constant dense<0.000000e+00> : vector<128xf32>
    %95 = vector.multi_reduction <add>, %94, %cst_62 [0] : vector<16x128xf32> to vector<128xf32>
    %96 = vector.shape_cast %95 : vector<128xf32> to vector<1x128xf32>
    %c8_i32_63 = arith.constant 8 : i32
    %97 = tpu.dynamic_rotate %96 by %c8_i32_63 dim 1 : vector<1x128xf32>, i32 -> vector<1x128xf32>
    %98 = arith.addf %96, %97 : vector<1x128xf32>
    %c16_i32_64 = arith.constant 16 : i32
    %99 = tpu.dynamic_rotate %98 by %c16_i32_64 dim 1 : vector<1x128xf32>, i32 -> vector<1x128xf32>
    %100 = arith.addf %98, %99 : vector<1x128xf32>
    %c32_i32_65 = arith.constant 32 : i32
    %101 = tpu.dynamic_rotate %100 by %c32_i32_65 dim 1 : vector<1x128xf32>, i32 -> vector<1x128xf32>
    %102 = arith.addf %100, %101 : vector<1x128xf32>
    %c64_i32_66 = arith.constant 64 : i32
    %103 = tpu.dynamic_rotate %102 by %c64_i32_66 dim 1 : vector<1x128xf32>, i32 -> vector<1x128xf32>
    %104 = arith.addf %102, %103 : vector<1x128xf32>
    %cst_67 = arith.constant 3.906250e-03 : f32
    %105 = vector.broadcast %cst_67 : f32 to vector<1x128xf32>
    %106 = arith.mulf %104, %105 : vector<1x128xf32>
    %cst_68 = arith.constant 9.99999974E-6 : f32
    %107 = vector.broadcast %cst_68 : f32 to vector<1x128xf32>
    %108 = arith.addf %106, %107 : vector<1x128xf32>
    %109 = math.rsqrt %108 : vector<1x128xf32>
    %110 = vector.broadcast %109 : vector<1x128xf32> to vector<16x128xf32>
    %111 = arith.mulf %93, %110 : vector<16x128xf32>
    %cst_69 = arith.constant 0.000000e+00 : f32
    %112 = vector.broadcast %cst_69 : f32 to vector<16x128xf32>
    %113 = arith.cmpf oge, %111, %112 : vector<16x128xf32>
    %cst_70 = arith.constant 2.000000e-01 : f32
    %114 = vector.broadcast %cst_70 : f32 to vector<16x128xf32>
    %115 = arith.mulf %114, %111 : vector<16x128xf32>
    %116 = arith.select %113, %111, %115 : vector<16x128xi1>, vector<16x128xf32>
    %c1_71 = arith.constant 1 : index
    %c0_72 = arith.constant 0 : index
    %c0_73 = arith.constant 0 : index
    %117 = vector.load %arg4[%c1_71, %c0_72, %c0_73] : memref<2x16x128xf32, #tpu.memory_space<vmem>>, vector<1x16x128xf32>
    %118 = vector.shape_cast %117 : vector<1x16x128xf32> to vector<16x128xf32>
    %119 = vector.shape_cast %116 : vector<16x128xf32> to vector<1x16x128xf32>
    tpu.vector_store %arg4[%c1_71, %c0_72, %c0_73], %119 {strides = array<i32>} : memref<2x16x128xf32, #tpu.memory_space<vmem>>, vector<1x16x128xf32>,
    return
  }
  func.func @transform_0(%arg0: i32) -> (i32, i32, i32) {
    %c0_i32 = arith.constant 0 : i32
    %c0_i32_0 = arith.constant 0 : i32
    %c0_i32_1 = arith.constant 0 : i32
    return %arg0, %c0_i32, %c0_i32_0 : i32, i32, i32
  }
  func.func @transform_1(%arg0: i32) -> (i32, i32, i32) {
    %c0_i32 = arith.constant 0 : i32
    %c0_i32_0 = arith.constant 0 : i32
    %c0_i32_1 = arith.constant 0 : i32
    %c0_i32_2 = arith.constant 0 : i32
    return %c0_i32, %c0_i32_0, %c0_i32_1 : i32, i32, i32
  }
  func.func @transform_2(%arg0: i32) -> (i32, i32) {
    %c0_i32 = arith.constant 0 : i32
    %c0_i32_0 = arith.constant 0 : i32
    %c0_i32_1 = arith.constant 0 : i32
    return %c0_i32, %c0_i32_0 : i32, i32
  }
  func.func @transform_3(%arg0: i32) -> (i32, i32, i32) {
    %c0_i32 = arith.constant 0 : i32
    %c0_i32_0 = arith.constant 0 : i32
    %c0_i32_1 = arith.constant 0 : i32
    return %arg0, %c0_i32, %c0_i32_0 : i32, i32, i32
  }
}

</mosaic_0001>

<bundles_post_ra>
// kernel: tpu_custom_call.1
= control target key start
LH: loop header
LB: loop body
LE: loop exit
PB: predicated region body
PF: predicated region fallthrough
CT: control target
= control target key end

     0   :  { %8 = vsyncpa [#allocation3], 0  ;;  %s1212_s0 = inlined_call_operand.vmem [shape: bf16[2,18,72], index: 0, kind: input, shape index: {}]   ;;  %s1213_s1 = inlined_call_operand.hbm [shape: bf16[3,72,128], index: 1, kind: input, shape index: {}]   ;;  %s1214_s2 = inlined_call_operand.vmem [shape: f32[1,128], index: 2, kind: input, shape index: {}]   ;;  %s1215_s3 = inlined_call_operand.hbm [shape: f32[2,16,128], index: 3, kind: output, shape index: {}]  }
   0x1   :  { %9 = vsyncpa [#allocation4], 0  ;;  %s1027_s12 = smov [#allocation2]   ;;  %s979_s16 = scalar_lea.hbm %s1213_s1, 1728 }
   0x2   :  { %s17_s13 = sshll.u32 %s1027_s12, 4  ;;  %p980_p0 = scmp.ne.s32.totalorder %s1213_s1, %s979_s16  ;;  %s18_s13 = int_to_ptr.vmem [resolvable:$true] %s17_s13 }
   0x3   :  { %p983_p1 = scmp.lt.u32.totalorder %s979_s16, %s1213_s1 }
   0x5   :  { %p985_p2 = pnand %p983_p1, %p980_p0 }
   0x7   :  { %988 = shalt.err (!%p985_p2)
}
   0x8   :  { %s989_s21 = scalar_lea.vmem %s18_s13, 1728  ;;  %p994_p4 = scmp.lt.s32.totalorder %s18_s13, %s18_s13 }
   0x9   :  { %p990_p3 = scmp.ne.s32.totalorder %s18_s13, %s989_s21  ;;  %p995_p5 = scmp.lt.s32.totalorder %s989_s21, %s989_s21 }
   0xb   :  { %p996_p6 = por %p995_p5, %p994_p4 }
   0xd   :  { %p997_p7 = pnand %p996_p6, %p990_p3 }
   0xf   :  { %1000 = shalt.err (!%p997_p7)
}
  0x10   :  { %s1028_s22 = smov 64   ;;  %s1029_s23 = smov 4  }
  0x11   :  { %23 = dma.hbm_to_vmem [thread:$0]  %s1213_s1, 1728, %s18_s13, [#allocation3], %s1028_s22, %s1028_s22, %s1029_s23  }
  0x12   :  { %1023 = dma.done.wait [#allocation3], 1728  }
  0x13   :  { %1024 = vsyncadd [#allocation3], 4294965568  ;;  %v1030_v0 = vmov 0.0   ;;  %vm1031_vm0 = vmmov 0   ;;  %v939_v1 = vld [vmem:[#allocation2 + $0x24] sm:$0xff]   ;;  %v941_v3 = vld [vmem:[#allocation2 + $0x2c] sm:$0xff]  }
  0x14   :  { %845 = vmatprep.subr.bf16.mxu0 %v1030_v0  ;;  %859 = vmatprep.subr.bf16.mxu1 %v1030_v0  ;;  %v940_v2 = vld [vmem:[#allocation2] sm:$0xff]   ;;  %v942_v4 = vld [vmem:[#allocation2 + $0x8] sm:$0xff]   ;;  %v943_v5 = vld [vmem:[#allocation2 + $0x34] sm:$0xff]   ;;  %vm60_vm1 = vsmask.f32 7424  ;;  %vm104_vm2 = vcmask 1043456  }
  0x15   :  { %855 = vmatprep.mubr.msk.bf16.mxu0 %vm1031_vm0, %v1030_v0  ;;  %869 = vmatprep.mubr.msk.bf16.mxu1 %vm1031_vm0, %v1030_v0  ;;  %v944_v6 = vld [vmem:[#allocation2 + $0x10] sm:$0xff]   ;;  %v945_v7 = vld [vmem:[#allocation2 + $0x3c] sm:$0xff]   ;;  %v947_v8 = vld [vmem:[#allocation2 + $0x44] ss:$0 sps:$4 sm:$0xff]   ;;  %vm100_vm3 = vcmask 588800   ;;  %vm236_vm4 = vcmask 1046528  }
  0x16   :  { %846 = vmatpush3.bf16.msra.mxu0 %v939_v1  ;;  %860 = vmatpush3.bf16.msra.mxu1 %v940_v2  ;;  %v30_v9 = vld [vmem:[%s1212_s0] sm:$0xf]  ;;  %v1087_v10 = vld [vmem:[%s1212_s0 + $0x4] sm:$0xf]  ;;  %v946_v11 = vld [vmem:[#allocation2 + $0x18] sm:$0xff]   ;;  %v106_v18 = vsel %vm104_vm2, %v947_v8, 0 }
  0x17   :  { %847 = vmatprep.subr.bf16.mxu0 %v1030_v0  ;;  %861 = vmatprep.subr.bf16.mxu1 %v1030_v0  ;;  %v761_v12 = vcombine.low %v30_v9, %v1087_v10  ;;  %v1093_v13 = vld [vmem:[%s1212_s0 + $0x8] ss:$0 sps:$4 sm:$0x11]   ;;  %v948_v14 = vld [vmem:[#allocation2 + $0x20] ss:$0 sps:$4 sm:$0xff]   ;;  %v951_v24 = vld [vmem:[#allocation2 + $0x48] sm:$0xff]  }
  0x18   :  { %v69_v17 = vshll.u32 %v1093_v13, 16  ;;  %v179_v21 = vsel %vm104_vm2, %v948_v14, 0  ;;  %v952_v25 = vld [vmem:[#allocation2 + $0x24] sm:$0xff]   ;;  %v783_v26 = vld [vmem:[%s1212_s0 + $0xc] sm:$0xf]  ;;  %v954_v29 = vld [vmem:[#allocation2 + $0x2c] sm:$0xff]  }
  0x19   :  { %v62_v15 = vshrl.u32 %v761_v12, 16  ;;  %v64_v16 = vshll.u32 %v761_v12, 16  ;;  %v1112_v27 = vld [vmem:[%s1212_s0 + $0x10] sm:$0xf]  ;;  %v953_v28 = vld [vmem:[#allocation2 + $0x50] sm:$0xff]   ;;  %v957_v36 = vld [vmem:[#allocation2 + $0x60] sm:$0xff]  }
  0x1a   :  { %848 = vmatpush3.bf16.msra.mxu0 %v941_v3  ;;  %862 = vmatpush3.bf16.msra.mxu1 %v942_v4  ;;  %v71_v20 = vrot.slane %v69_v17, 1  ;;  %v1117_v30 = vcombine.low %v783_v26, %v1112_v27  ;;  %v955_v31 = vld [vmem:[#allocation2 + $0x58] sm:$0xff]   ;;  %v222_v33 = vld [vmem:[%s1212_s0] sm:$0xe]  ;;  %v959_v37 = vld [vmem:[#allocation2 + $0x68] ss:$0 sps:$4 sm:$0xff]  }
  0x1b   :  { %849 = vmatprep.subr.bf16.mxu0 %v1030_v0  ;;  %863 = vmatprep.subr.bf16.mxu1 %v1030_v0  ;;  %v66_v19 = vrot.slane %v64_v16, 1  ;;  %v1127_v32 = vld [vmem:[%s1212_s0 + $0x14] ss:$0 sps:$4 sm:$0x11]   ;;  %v956_v34 = vld [vmem:[#allocation2 + $0x34] sm:$0xff]   ;;  %v775_v38 = vcombine.low %v222_v33, %v1087_v10  ;;  %v238_v45 = vrot.slane %v1093_v13, 1 }
  0x1c   :  { %v422_v35 = vshll.u32 %v1117_v30, 16  ;;  %v958_v39 = vld [vmem:[#allocation2 + $0x3c] sm:$0xff]   ;;  %v420_v40 = vshrl.u32 %v1117_v30, 16  ;;  %v427_v42 = vshll.u32 %v1127_v32, 16  ;;  %v960_v43 = vld [vmem:[#allocation2 + $0x44] ss:$0 sps:$4 sm:$0xff]  }
  0x1d   :  { %v67_v22 = vor.u32 %v66_v19, %v62_v15  ;;  %v237_v44 = vrot.slane %v775_v38, 1  ;;  %v271_v46 = vsel %vm104_vm2, %v959_v37, 0  ;;  %v462_v49 = vsel %vm104_vm2, %v960_v43, 0  ;;  %v964_v51 = vld [vmem:[#allocation2] sm:$0xff]   ;;  %v965_v53 = vld [vmem:[#allocation2 + $0x48] sm:$0xff]   ;;  %v967_v55 = vld [vmem:[#allocation2 + $0x50] sm:$0xff]  }
  0x1e   :  { %850 = vmatpush3.bf16.msra.mxu0 %v943_v5  ;;  %864 = vmatpush3.bf16.msra.mxu1 %v944_v6  ;;  %v424_v41 = vrot.slane %v422_v35, 1  ;;  %v429_v48 = vrot.slane %v427_v42, 1  ;;  %v966_v54 = vld [vmem:[#allocation2 + $0x8] sm:$0xff]   ;;  %v968_v56 = vld [vmem:[#allocation2 + $0x10] sm:$0xff]   ;;  %v969_v57 = vld [vmem:[#allocation2 + $0x58] sm:$0xff]   ;;  %v592_v3 = vrot.slane %v1127_v32, 1 }
  0x1f   :  { %851 = vmatprep.subr.bf16.mxu0 %v1030_v0  ;;  %865 = vmatprep.subr.bf16.mxu1 %v1030_v0  ;;  %v72_v23 = vsel %vm60_vm1, %v67_v22, %v71_v20  ;;  %v239_v50 = vsel %vm236_vm4, %v237_v44, %v238_v45  ;;  %v800_v58 = vld [vmem:[%s1212_s0 + $0xc] sm:$0xe]  ;;  %v970_v59 = vld [vmem:[#allocation2 + $0x18] sm:$0xff]   ;;  %v971_v60 = vld [vmem:[#allocation2 + $0x60] sm:$0xff]   ;;  %s1032_s15 = smov 8   ;;  %s1034_s16 = smov 32  }
  0x20   :  { %v425_v47 = vor.u32 %v424_v41, %v420_v40  ;;  %v972_v61 = vld [vmem:[#allocation2 + $0x20] ss:$0 sps:$4 sm:$0xff]   ;;  %v801_v62 = vcombine.low %v800_v58, %v1112_v27  ;;  %v973_v63 = vld [vmem:[#allocation2 + $0x68] ss:$0 sps:$4 sm:$0xff]   ;;  %s1035_s17 = smov [#allocation5]  }
  0x21   :  { %v535_v1 = vsel %vm104_vm2, %v972_v61, 0  ;;  %v625_v4 = vsel %vm104_vm2, %v973_v63, 0  ;;  %v782_v19 = vld [vmem:[%s1214_s2] ss:$0 sm:$0xff]  ;;  %s1033_s2 = smov 16   ;;  %s749_s18 = sshll.u32 %s1035_s17, 4  ;;  %s750_s18 = int_to_ptr.vmem [resolvable:$true] %s749_s18 }
  0x22   :  { %852 = vmatpush3.bf16.msra.mxu0 %v945_v7  ;;  %866 = vmatpush3.bf16.msra.mxu1 %v946_v11  ;;  %v430_v52 = vsel %vm60_vm1, %v425_v47, %v429_v48  ;;  %v591_v2 = vrot.slane %v801_v62, 1  ;;  %s1001_s19 = scalar_lea.vmem %s750_s18, 512  ;;  %p1006_p9 = scmp.lt.s32.totalorder %s750_s18, %s750_s18 }
  0x23   :  { %853 = vmatprep.subr.bf16.mxu0 %v1030_v0  ;;  %867 = vmatprep.subr.bf16.mxu1 %v1030_v0  ;;  %p1002_p8 = scmp.ne.s32.totalorder %s750_s18, %s1001_s19  ;;  %p1007_p10 = scmp.lt.s32.totalorder %s1001_s19, %s1001_s19 }
  0x24   :  { %v593_v5 = vsel %vm236_vm4, %v591_v2, %v592_v3 }
  0x25   :  { %p1008_p11 = por %p1007_p10, %p1006_p9 }
  0x26   :  { %854 = vmatpush3.bf16.msra.mxu0 %v106_v18  ;;  %868 = vmatpush3.bf16.msra.mxu1 %v179_v21 }
  0x27   :  { %873 = vmatprep.subr.bf16.mxu0 %v1030_v0  ;;  %887 = vmatprep.subr.bf16.mxu1 %v1030_v0  ;;  %p1009_p12 = pnand %p1008_p11, %p1002_p8 }
  0x29   :  { %856 = vmatmul.mubr.msk.bf16.vlgmr.msra.gmra.mrb[0].mxu0 %vm100_vm3, %v72_v23  ;;  %870 = vmatmul.mubr.msk.bf16.vlgmr.msra.gmra.mrb[0].mxu1 %vm100_vm3, %v761_v12 }
  0x2a   :  { %874 = vmatpush3.bf16.msra.mxu0 %v951_v24  ;;  %888 = vmatpush3.bf16.msra.mxu1 %v952_v25 }
  0x2b   :  { %875 = vmatprep.subr.bf16.mxu0 %v1030_v0  ;;  %889 = vmatprep.subr.bf16.mxu1 %v1030_v0 }
  0x2c   :  { %883 = vmatprep.mubr.msk.bf16.mxu0 %vm1031_vm0, %v1030_v0  ;;  %897 = vmatprep.mubr.msk.bf16.mxu1 %vm1031_vm0, %v1030_v0 }
  0x2e   :  { %876 = vmatpush3.bf16.msra.mxu0 %v953_v28  ;;  %890 = vmatpush3.bf16.msra.mxu1 %v954_v29 }
  0x2f   :  { %877 = vmatprep.subr.bf16.mxu0 %v1030_v0  ;;  %891 = vmatprep.subr.bf16.mxu1 %v1030_v0 }
  0x32   :  { %878 = vmatpush3.bf16.msra.mxu0 %v955_v31  ;;  %892 = vmatpush3.bf16.msra.mxu1 %v956_v34 }
  0x33   :  { %879 = vmatprep.subr.bf16.mxu0 %v1030_v0  ;;  %893 = vmatprep.subr.bf16.mxu1 %v1030_v0 }
  0x36   :  { %880 = vmatpush3.bf16.msra.mxu0 %v957_v36  ;;  %894 = vmatpush3.bf16.msra.mxu1 %v958_v39 }
  0x37   :  { %881 = vmatprep.subr.bf16.mxu0 %v1030_v0  ;;  %895 = vmatprep.subr.bf16.mxu1 %v1030_v0 }
  0x3a   :  { %882 = vmatpush3.bf16.msra.mxu0 %v271_v46  ;;  %896 = vmatpush3.bf16.msra.mxu1 %v462_v49 }
  0x3b   :  { %901 = vmatprep.subr.bf16.mxu0 %v1030_v0  ;;  %915 = vmatprep.subr.bf16.mxu1 %v1030_v0 }
  0x3d   :  { %884 = vmatmul.mubr.msk.bf16.vlgmr.msra.gmra.mrb[4].mxu0 %vm100_vm3, %v239_v50  ;;  %898 = vmatmul.mubr.msk.bf16.vlgmr.msra.gmra.mrb[4].mxu1 %vm100_vm3, %v430_v52 }
  0x3e   :  { %902 = vmatpush3.bf16.msra.mxu0 %v964_v51  ;;  %916 = vmatpush3.bf16.msra.mxu1 %v965_v53 }
  0x3f   :  { %903 = vmatprep.subr.bf16.mxu0 %v1030_v0  ;;  %917 = vmatprep.subr.bf16.mxu1 %v1030_v0 }
  0x40   :  { %911 = vmatprep.mubr.msk.bf16.mxu0 %vm1031_vm0, %v1030_v0  ;;  %925 = vmatprep.mubr.msk.bf16.mxu1 %vm1031_vm0, %v1030_v0 }
  0x42   :  { %904 = vmatpush3.bf16.msra.mxu0 %v966_v54  ;;  %918 = vmatpush3.bf16.msra.mxu1 %v967_v55 }
  0x43   :  { %905 = vmatprep.subr.bf16.mxu0 %v1030_v0  ;;  %919 = vmatprep.subr.bf16.mxu1 %v1030_v0 }
  0x46   :  { %906 = vmatpush3.bf16.msra.mxu0 %v968_v56  ;;  %920 = vmatpush3.bf16.msra.mxu1 %v969_v57 }
  0x47   :  { %907 = vmatprep.subr.bf16.mxu0 %v1030_v0  ;;  %921 = vmatprep.subr.bf16.mxu1 %v1030_v0 }
  0x4a   :  { %908 = vmatpush3.bf16.msra.mxu0 %v970_v59  ;;  %922 = vmatpush3.bf16.msra.mxu1 %v971_v60 }
  0x4b   :  { %909 = vmatprep.subr.bf16.mxu0 %v1030_v0  ;;  %923 = vmatprep.subr.bf16.mxu1 %v1030_v0 }
  0x4e   :  { %910 = vmatpush3.bf16.msra.mxu0 %v535_v1  ;;  %924 = vmatpush3.bf16.msra.mxu1 %v625_v4 }
  0x51   :  { %912 = vmatmul.mubr.msk.bf16.vlgmr.msra.gmra.mrb[8].mxu0 %vm100_vm3, %v1117_v30  ;;  %926 = vmatmul.mubr.msk.bf16.vlgmr.msra.gmra.mrb[8].mxu1 %vm100_vm3, %v593_v5  ;;  %v345_v5 = vlaneseq }
  0xfc   :  { %v142_v6 = vpop.f32.mrb[0].mxu0  ;;  %v215_v7 = vpop.f32.mrb[0].mxu1 }
  0xfd   :  { %v857_v8 = vpop.f32.mrb[1].mxu0  ;;  %v216_v9 = vadd.f32 %v215_v7, %v142_v6  ;;  %v871_v10 = vpop.f32.mrb[1].mxu1  ;;  %v346_v6 = vshrl.u32 %v345_v5, 7 }
  0xfe   :  { %v145_v11 = vpop.f32.mrb[2].mxu0  ;;  %v218_v12 = vpop.f32.mrb[2].mxu1 }
  0xff   :  { %v858_v13 = vpop.f32.mrb[3].mxu0  ;;  %v219_v0 = vadd.f32 %v218_v12, %v145_v11  ;;  %v872_v14 = vpop.f32.mrb[3].mxu1  ;;  %v1185_v8 = vsub.s32 0, %v346_v6 }
 0x110   :  { %v307_v15 = vpop.f32.mrb[4].mxu0  ;;  %v498_v17 = vpop.f32.mrb[4].mxu1 }
 0x111   :  { %v314_v16 = vadd.f32 %v307_v15, %v216_v9  ;;  %v885_v18 = vpop.f32.mrb[5].mxu0  ;;  %v899_v20 = vpop.f32.mrb[5].mxu1 }
 0x112   :  { %v310_v21 = vpop.f32.mrb[6].mxu0  ;;  %v501_v23 = vpop.f32.mrb[6].mxu1 }
 0x113   :  { %v315_v22 = vadd.f32 %v310_v21, %v219_v0  ;;  %v886_v24 = vpop.f32.mrb[7].mxu0  ;;  %v900_v25 = vpop.f32.mrb[7].mxu1  ;;  %v323_v26 = vadd.f32 %v782_v19, %v314_v16 }
 0x115   :  { %v324_v27 = vadd.f32 %v782_v19, %v315_v22 }
 0x117   :  { %v325_v28 = vadd.f32 %v324_v27, %v323_v26 }
 0x119   :  { %v326_v29 = vrot.slane %v325_v28, 4 }
 0x11b   :  { %v327_v30 = vadd.f32 %v326_v29, %v325_v28 }
 0x11d   :  { %v328_v31 = vrot.slane %v327_v30, 2 }
 0x11f   :  { %v329_v32 = vadd.f32 %v328_v31, %v327_v30 }
 0x121   :  { %v330_v33 = vrot.slane %v329_v32, 1 }
 0x123   :  { %v331_v34 = vadd.f32 %v330_v33, %v329_v32 }
 0x124   :  { %v571_v35 = vpop.f32.mrb[8].mxu0  ;;  %v661_v37 = vpop.f32.mrb[8].mxu1 }
 0x125   :  { %v572_v36 = vadd.f32 %v571_v35, %v498_v17  ;;  %332 = vrot.lane.b32.xlu0 %v331_v34, %s1032_s15  ;;  %v913_v38 = vpop.f32.mrb[9].mxu0  ;;  %v927_v39 = vpop.f32.mrb[9].mxu1 }
 0x126   :  { %v574_v40 = vpop.f32.mrb[10].mxu0  ;;  %v664_v43 = vpop.f32.mrb[10].mxu1 }
 0x127   :  { %v668_v41 = vadd.f32 %v661_v37, %v572_v36  ;;  %v575_v42 = vadd.f32 %v574_v40, %v501_v23  ;;  %v914_v44 = vpop.f32.mrb[11].mxu0  ;;  %v928_v45 = vpop.f32.mrb[11].mxu1 }
 0x129   :  { %v669_v46 = vadd.f32 %v664_v43, %v575_v42  ;;  %v677_v47 = vadd.f32 %v782_v19, %v668_v41 }
 0x12b   :  { %v678_v48 = vadd.f32 %v782_v19, %v669_v46 }
 0x12d   :  { %v679_v49 = vadd.f32 %v678_v48, %v677_v47 }
 0x12f   :  { %v680_v50 = vrot.slane %v679_v49, 4 }
 0x131   :  { %v681_v51 = vadd.f32 %v680_v50, %v679_v49 }
 0x133   :  { %v682_v52 = vrot.slane %v681_v51, 2 }
 0x135   :  { %v683_v53 = vadd.f32 %v682_v52, %v681_v51 }
 0x137   :  { %v684_v54 = vrot.slane %v683_v53, 1 }
 0x139   :  { %v685_v55 = vadd.f32 %v684_v54, %v683_v53 }
 0x13b   :  { %686 = vrot.lane.b32.xlu0 %v685_v55, %s1032_s15 }
 0x197   :  { %v333_v56 = vpop.permute.xlu0 %332 }
 0x198   :  { %v334_v57 = vadd.f32 %v333_v56, %v331_v34 }
 0x19a   :  { %335 = vrot.lane.b32.xlu1 %v334_v57, %s1033_s2 }
 0x1ad   :  { %v687_v58 = vpop.permute.xlu0 %686 }
 0x1ae   :  { %v688_v59 = vadd.f32 %v687_v58, %v685_v55 }
 0x1b0   :  { %689 = vrot.lane.b32.xlu1 %v688_v59, %s1033_s2 }
 0x20c   :  { %v336_v60 = vpop.permute.xlu1 %335 }
 0x20d   :  { %v337_v61 = vadd.f32 %v336_v60, %v334_v57 }
 0x20f   :  { %338 = vrot.lane.b32.xlu0 %v337_v61, %s1034_s16 }
 0x222   :  { %v690_v62 = vpop.permute.xlu1 %689 }
 0x223   :  { %v691_v63 = vadd.f32 %v690_v62, %v688_v59 }
 0x225   :  { %692 = vrot.lane.b32.xlu1 %v691_v63, %s1034_s16 }
 0x281   :  { %v339_v1 = vpop.permute.xlu0 %338 }
 0x282   :  { %v340_v2 = vadd.f32 %v339_v1, %v337_v61 }
 0x284   :  { %341 = vrot.lane.b32.xlu0 %v340_v2, %s1028_s22 }
 0x297   :  { %v693_v3 = vpop.permute.xlu1 %692 }
 0x298   :  { %v694_v4 = vadd.f32 %v693_v3, %v691_v63 }
 0x29a   :  { %695 = vrot.lane.b32.xlu1 %v694_v4, %s1028_s22 }
 0x2f6   :  { %v342_v7 = vpop.permute.xlu0 %341 }
 0x2f7   :  { %v343_v9 = vadd.f32 %v342_v7, %v340_v2 }
 0x2f9   :  { %v344_v10 = vmul.f32 0.00390625, %v343_v9 }
 0x2fb   :  { %v348_v11 = vrot.slane %v344_v10, %v1185_v8 }
 0x2fd   :  { %v349_v12 = vsub.f32 %v323_v26, %v348_v11  ;;  %v350_v13 = vsub.f32 %v324_v27, %v348_v11 }
 0x2ff   :  { %v351_v0 = vmul.f32 %v349_v12, %v349_v12  ;;  %v352_v14 = vmul.f32 %v350_v13, %v350_v13 }
 0x301   :  { %v353_v15 = vadd.f32 %v352_v14, %v351_v0 }
 0x303   :  { %v354_v16 = vrot.slane %v353_v15, 4 }
 0x305   :  { %v355_v17 = vadd.f32 %v354_v16, %v353_v15 }
 0x307   :  { %v356_v18 = vrot.slane %v355_v17, 2 }
 0x309   :  { %v357_v19 = vadd.f32 %v356_v18, %v355_v17 }
 0x30b   :  { %v358_v20 = vrot.slane %v357_v19, 1 }
 0x30c   :  { %v696_v21 = vpop.permute.xlu1 %695 }
 0x30d   :  { %v697_v22 = vadd.f32 %v696_v21, %v694_v4  ;;  %v359_v23 = vadd.f32 %v358_v20, %v357_v19 }
 0x30f   :  { %v698_v24 = vmul.f32 0.00390625, %v697_v22  ;;  %360 = vrot.lane.b32.xlu0 %v359_v23, %s1032_s15 }
 0x311   :  { %v702_v25 = vrot.slane %v698_v24, %v1185_v8 }
 0x313   :  { %v703_v28 = vsub.f32 %v677_v47, %v702_v25  ;;  %v704_v29 = vsub.f32 %v678_v48, %v702_v25 }
 0x315   :  { %v705_v26 = vmul.f32 %v703_v28, %v703_v28  ;;  %v706_v27 = vmul.f32 %v704_v29, %v704_v29 }
 0x317   :  { %v707_v30 = vadd.f32 %v706_v27, %v705_v26 }
 0x319   :  { %v708_v31 = vrot.slane %v707_v30, 4 }
 0x31b   :  { %v709_v32 = vadd.f32 %v708_v31, %v707_v30 }
 0x31d   :  { %v710_v33 = vrot.slane %v709_v32, 2 }
 0x31f   :  { %v711_v34 = vadd.f32 %v710_v33, %v709_v32 }
 0x321   :  { %v712_v35 = vrot.slane %v711_v34, 1 }
 0x323   :  { %v713_v36 = vadd.f32 %v712_v35, %v711_v34 }
 0x325   :  { %714 = vrot.lane.b32.xlu1 %v713_v36, %s1032_s15 }
 0x381   :  { %v361_v37 = vpop.permute.xlu0 %360 }
 0x382   :  { %v362_v38 = vadd.f32 %v361_v37, %v359_v23 }
 0x384   :  { %363 = vrot.lane.b32.xlu0 %v362_v38, %s1033_s2 }
 0x397   :  { %v715_v39 = vpop.permute.xlu1 %714 }
 0x398   :  { %v716_v40 = vadd.f32 %v715_v39, %v713_v36 }
 0x39a   :  { %717 = vrot.lane.b32.xlu1 %v716_v40, %s1033_s2 }
 0x3f6   :  { %v364_v41 = vpop.permute.xlu0 %363 }
 0x3f7   :  { %v365_v42 = vadd.f32 %v364_v41, %v362_v38 }
 0x3f9   :  { %366 = vrot.lane.b32.xlu0 %v365_v42, %s1034_s16 }
 0x40c   :  { %v718_v43 = vpop.permute.xlu1 %717 }
 0x40d   :  { %v719_v44 = vadd.f32 %v718_v43, %v716_v40 }
 0x40f   :  { %720 = vrot.lane.b32.xlu1 %v719_v44, %s1034_s16 }
 0x46b   :  { %v367_v45 = vpop.permute.xlu0 %366 }
 0x46c   :  { %v368_v46 = vadd.f32 %v367_v45, %v365_v42 }
 0x46e   :  { %369 = vrot.lane.b32.xlu0 %v368_v46, %s1028_s22 }
 0x481   :  { %v721_v47 = vpop.permute.xlu1 %720 }
 0x482   :  { %v722_v48 = vadd.f32 %v721_v47, %v719_v44 }
 0x484   :  { %723 = vrot.lane.b32.xlu1 %v722_v48, %s1028_s22 }
 0x4e0   :  { %v370_v49 = vpop.permute.xlu0 %369 }
 0x4e1   :  { %v371_v50 = vadd.f32 %v370_v49, %v368_v46 }
 0x4e3   :  { %v372_v51 = vmul.f32 0.00390625, %v371_v50 }
 0x4e5   :  { %v373_v52 = vadd.f32 1e-05, %v372_v51 }
 0x4e7   :  { %975 = vrsqrt.f32 %v373_v52 }
 0x4f1   :  { %v976_v53 = vpop.eup %975 }
 0x4f2   :  { %v378_v54 = vrot.slane %v976_v53, %v1185_v8 }
 0x4f4   :  { %v379_v55 = vmul.f32 %v378_v54, %v349_v12  ;;  %v380_v56 = vmul.f32 %v378_v54, %v350_v13 }
 0x4f6   :  { %v383_v57 = vmul.f32 0.2, %v379_v55  ;;  %v384_v58 = vmul.f32 0.2, %v380_v56  ;;  %v724_v59 = vpop.permute.xlu1 %723  ;;  %vm381_vm5 = vcmp.ge.f32.partialorder %v379_v55, 0.0  ;;  %vm382_vm6 = vcmp.ge.f32.partialorder %v380_v56, 0.0 }
 0x4f7   :  { %v725_v60 = vadd.f32 %v724_v59, %v722_v48 }
 0x4f8   :  { %v385_v61 = vsel %vm381_vm5, %v379_v55, %v383_v57  ;;  %v386_v62 = vsel %vm382_vm6, %v380_v56, %v384_v58 }
 0x4f9   :  { %v726_v63 = vmul.f32 0.00390625, %v725_v60  ;;  %387 = vst [vmem:[#allocation5] sm:$0xff] %v385_v61  ;;  %388 = vst [vmem:[#allocation5 + $0x8] sm:$0xff] %v386_v62 }
 0x4fb   :  { %v727_v1 = vadd.f32 1e-05, %v726_v63 }
 0x4fd   :  { %977 = vrsqrt.f32 %v727_v1 }
 0x507   :  { %v978_v2 = vpop.eup %977 }
 0x508   :  { %v732_v3 = vrot.slane %v978_v2, %v1185_v8 }
 0x50a   :  { %v733_v4 = vmul.f32 %v732_v3, %v703_v28  ;;  %v734_v5 = vmul.f32 %v732_v3, %v704_v29 }
 0x50c   :  { %v737_v6 = vmul.f32 0.2, %v733_v4  ;;  %v738_v7 = vmul.f32 0.2, %v734_v5  ;;  %vm735_vm7 = vcmp.ge.f32.partialorder %v733_v4, 0.0  ;;  %vm736_vm8 = vcmp.ge.f32.partialorder %v734_v5, 0.0 }
 0x50e   :  { %v739_v9 = vsel %vm735_vm7, %v733_v4, %v737_v6  ;;  %v740_v10 = vsel %vm736_vm8, %v734_v5, %v738_v7 }
 0x50f   :  { %742 = vst [vmem:[#allocation5 + $0x10] sm:$0xff] %v739_v9  ;;  %743 = vst [vmem:[#allocation5 + $0x18] sm:$0xff] %v740_v10 }
 0x510   :  { %1012 = shalt.err (!%p1009_p12)
}
 0x511   :  { %s1013_s22 = scalar_lea.hbm %s1215_s3, 512 }
 0x512   :  { %p1014_p13 = scmp.ne.s32.totalorder %s1215_s3, %s1013_s22  ;;  %p1017_p0 = scmp.lt.u32.totalorder %s1013_s22, %s1215_s3 }
 0x514   :  { %p1019_p1 = pnand %p1017_p0, %p1014_p13 }
 0x516   :  { %1022 = shalt.err (!%p1019_p1)
}
 0x517   :  { %s1036_s26 = smov 128  }
 0x518   :  { %755 = dma.vmem_to_hbm [thread:$0]  %s750_s18, 512, %s1215_s3, [#allocation4], %s1036_s26, %s1036_s26, %s1032_s15  }
 0x519   :  { %1025 = dma.done.wait [#allocation4], 512  }
 0x51a   :  { %1026 = vsyncadd [#allocation4], 4294966784 }
 0x51b   :  { %759 = vsyncpa [#allocation3], 1 }
 0x51c   :  { %760 = vsyncpa [#allocation4], 1 }

</bundles_post_ra>
